<compile_context>
chip_gen: v5e
topology: v5e:2x2
jax: 0.10.0
libtpu: 0.0.40
codegen_flags: <defaults>
</compile_context>

<pallas_src>
import functools

import jax
import jax.numpy as jnp
from jax.experimental import pallas as pl
from jax.experimental.pallas import tpu as pltpu


def _round_up(x, m):
    return (x + m - 1) // m * m


def _tpu_generation_info():
    """(physical VMEM bytes per core, tensorcores per chip) with safe fallback."""
    try:
        kind = jax.devices()[0].device_kind.lower()
    except Exception:
        kind = ""
    if "v7" in kind:
        return 64 << 20, 2          # v7x: 64 MiB VMEM per TC, 2 TCs/chip
    return 128 << 20, 1             # v5e / v6e: 128 MiB VMEM, 1 TC/chip


def _choose_tile_n(n_rows8, deg, D, ft_itemsize, out_itemsize,
                   vmem_block_budget, num_cores):
    """Largest row tile (multiple of 8) whose blocks + small temporaries fit."""
    per_row = 2 * deg * D * ft_itemsize     # ft block, double-buffered
    per_row += 2 * D * out_itemsize         # output block, double-buffered
    per_row += 2 * deg * 4                  # a12 block, double-buffered
    per_row += 2 * D * 4                    # in-kernel f32 acc / live ft slice
    tile = (vmem_block_budget // per_row) // 8 * 8
    tile = max(8, min(tile, 8192, n_rows8))
    if num_cores >= 2:
        # Megacore: keep at least `num_cores` grid steps so "parallel" can shard.
        while tile > 8 and pl.cdiv(n_rows8, tile) < num_cores:
            tile = max(8, _round_up(tile // 2, 8))
    return tile


def _gat_reduce_kernel(a12_ref, ft_ref, out_ref, *, deg, D):
    # a12_ref: (tn, deg) f32 = a1 + a2     ft_ref: (tn, deg*D)     out_ref: (tn, D)
    a = a12_ref[...]                                     # (tn, deg)

    # leaky_relu (PyTorch default negative_slope = 0.01)
    lr = jnp.where(a > 0, a, 0.01 * a)

    # numerically stable softmax over the neighbor axis, normalized up front
    m = jnp.max(lr, axis=1, keepdims=True)               # (tn, 1)
    ex = jnp.exp(lr - m)                                 # (tn, deg)
    denom = jnp.sum(ex, axis=1, keepdims=True)           # (tn, 1)
    w = ex * pl.reciprocal(denom, approx=False)          # (tn, deg), exact

    # deg-unrolled weighted sum: keeps intermediates at (tn, D), f32 accumulate.
    acc = w[:, 0:1] * ft_ref[:, 0:D].astype(jnp.float32)
    for k in range(1, deg):
        acc = acc + w[:, k:k + 1] * ft_ref[:, k * D:(k + 1) * D].astype(jnp.float32)

    out_ref[...] = acc.astype(out_ref.dtype)


def gat_reduce(a1, a2, ft, *, tile_n=None, out_dtype=jnp.float32):
    """a1: (N,1), a2: (N,deg,1), ft: (N,deg,D)  ->  accum (N,D) in out_dtype."""
    N, deg, D = ft.shape
    assert a1.shape == (N, 1)
    assert a2.shape == (N, deg, 1)

    # Fold a1 into a2 (tiny (N, deg) XLA op) -> one fewer kernel input stream.
    a12 = (a1.astype(jnp.float32) + a2.reshape(N, deg).astype(jnp.float32))

    # Lane-dense, metadata-only 2-D view of ft: last dim deg*D.
    ft2 = ft.reshape(N, deg * D)

    phys_vmem, num_cores = _tpu_generation_info()
    out_itemsize = jnp.dtype(out_dtype).itemsize
    n_rows8 = _round_up(N, 8)
    if tile_n is None:
        tile_n = _choose_tile_n(n_rows8, deg, D, ft.dtype.itemsize, out_itemsize,
                                vmem_block_budget=phys_vmem // 4,
                                num_cores=num_cores)
    tile_n = max(8, _round_up(min(tile_n, n_rows8), 8))

    grid = (pl.cdiv(N, tile_n),)     # ragged last block handled by Pallas; no ft copy

    out = pl.pallas_call(
        functools.partial(_gat_reduce_kernel, deg=deg, D=D),
        out_shape=jax.ShapeDtypeStruct((N, D), out_dtype),
        grid_spec=pltpu.PrefetchScalarGridSpec(
            num_scalar_prefetch=0,
            grid=grid,
            in_specs=[
                pl.BlockSpec((tile_n, deg), lambda i: (i, 0)),
                pl.BlockSpec((tile_n, deg * D), lambda i: (i, 0)),
            ],
            out_specs=pl.BlockSpec((tile_n, D), lambda i: (i, 0)),
        ),
        compiler_params=pltpu.CompilerParams(
            dimension_semantics=("parallel",),
            # Half of physical VMEM: 32 MiB on v7x (64 MiB/TC), 64 MiB on v5e/v6e
            # (128 MiB physical; also lifts v5e's 16 MiB default scoped limit).
            vmem_limit_bytes=phys_vmem // 2,
        ),
    )(a12, ft2)

    return out


def gat_reduce_ref(a1, a2, ft):
    a = a1[:, None, :] + a2
    lr = jnp.where(a > 0, a, 0.01 * a)
    e = jax.nn.softmax(lr, axis=1)
    return jnp.sum(e * ft.astype(jnp.float32), axis=1)


if __name__ == "__main__":
    # Small deterministic shapes: N=19 nodes (exercises the ragged last block),
    # deg=8 neighbors, D=128 features.
    N, DEG, D = 19, 8, 128
    key = jax.random.PRNGKey(0)
    k1, k2, k3 = jax.random.split(key, 3)
    a1 = jax.random.normal(k1, (N, 1), dtype=jnp.float32)
    a2 = jax.random.normal(k2, (N, DEG, 1), dtype=jnp.float32)
    ft = jax.random.normal(k3, (N, DEG, D), dtype=jnp.float32)

    out = gat_reduce(a1, a2, ft)
    out = jax.block_until_ready(out)

    ref = gat_reduce_ref(a1, a2, ft)
    assert out.shape == (N, D)
    assert jnp.allclose(out, ref, atol=1e-5, rtol=1e-5), "mismatch vs reference"

    print("KERNEL_OK")
</pallas_src>

<mosaic_0001>
module attributes {stable_mosaic.version = 11 : i64} {
  func.func @_gat_reduce_kernel(%arg0: i32, %arg1: memref<24x8xf32, #tpu.memory_space<vmem>>, %arg2: memref<24x1024xf32, #tpu.memory_space<vmem>>, %arg3: memref<24x128xf32, #tpu.memory_space<vmem>>) attributes {dimension_semantics = [#tpu.dimension_semantics<parallel>], iteration_bounds = array<i64: 1>, scalar_prefetch = 0 : i64, scratch_operands = 0 : i64, tpu.core_type = #tpu.core_type<tc>, window_params = [{transform_indices = @transform_0, window_bounds = array<i64: 24, 8>}, {transform_indices = @transform_1, window_bounds = array<i64: 24, 1024>}, {transform_indices = @transform_2, window_bounds = array<i64: 24, 128>}]} {
    %c0 = arith.constant 0 : index
    %c0_0 = arith.constant 0 : index
    %0 = vector.load %arg1[%c0, %c0_0] : memref<24x8xf32, #tpu.memory_space<vmem>>, vector<24x8xf32>
    %cst = arith.constant 0.000000e+00 : f32
    %1 = vector.broadcast %cst : f32 to vector<24x8xf32>
    %2 = arith.cmpf ogt, %0, %1 : vector<24x8xf32>
    %cst_1 = arith.constant 0.00999999977 : f32
    %3 = vector.broadcast %cst_1 : f32 to vector<24x8xf32>
    %4 = arith.mulf %3, %0 : vector<24x8xf32>
    %5 = arith.select %2, %0, %4 : vector<24x8xi1>, vector<24x8xf32>
    %cst_2 = arith.constant dense<0xFF800000> : vector<24xf32>
    %6 = vector.multi_reduction <maximumf>, %5, %cst_2 [1] : vector<24x8xf32> to vector<24xf32>
    %7 = vector.shape_cast %6 : vector<24xf32> to vector<24x1xf32>
    %8 = vector.broadcast %7 : vector<24x1xf32> to vector<24x8xf32>
    %9 = arith.subf %5, %8 : vector<24x8xf32>
    %10 = math.exp %9 : vector<24x8xf32>
    %cst_3 = arith.constant dense<0.000000e+00> : vector<24xf32>
    %11 = vector.multi_reduction <add>, %10, %cst_3 [1] : vector<24x8xf32> to vector<24xf32>
    %12 = vector.shape_cast %11 : vector<24xf32> to vector<24x1xf32>
    %13 = tpu.reciprocal %12 : vector<24x1xf32> -> vector<24x1xf32>
    %14 = vector.broadcast %13 : vector<24x1xf32> to vector<24x8xf32>
    %15 = arith.mulf %10, %14 : vector<24x8xf32>
    %16 = vector.extract_strided_slice %15 {offsets = [0, 0], sizes = [24, 1], strides = [1, 1]} : vector<24x8xf32> to vector<24x1xf32>
    %c0_4 = arith.constant 0 : index
    %c0_5 = arith.constant 0 : index
    %17 = vector.load %arg2[%c0_4, %c0_5] : memref<24x1024xf32, #tpu.memory_space<vmem>>, vector<24x128xf32>
    %18 = vector.broadcast %16 : vector<24x1xf32> to vector<24x128xf32>
    %19 = arith.mulf %18, %17 : vector<24x128xf32>
    %20 = vector.extract_strided_slice %15 {offsets = [0, 1], sizes = [24, 1], strides = [1, 1]} : vector<24x8xf32> to vector<24x1xf32>
    %c0_6 = arith.constant 0 : index
    %c128 = arith.constant 128 : index
    %21 = vector.load %arg2[%c0_6, %c128] : memref<24x1024xf32, #tpu.memory_space<vmem>>, vector<24x128xf32>
    %22 = vector.broadcast %20 : vector<24x1xf32> to vector<24x128xf32>
    %23 = arith.mulf %22, %21 : vector<24x128xf32>
    %24 = arith.addf %19, %23 : vector<24x128xf32>
    %25 = vector.extract_strided_slice %15 {offsets = [0, 2], sizes = [24, 1], strides = [1, 1]} : vector<24x8xf32> to vector<24x1xf32>
    %c0_7 = arith.constant 0 : index
    %c256 = arith.constant 256 : index
    %26 = vector.load %arg2[%c0_7, %c256] : memref<24x1024xf32, #tpu.memory_space<vmem>>, vector<24x128xf32>
    %27 = vector.broadcast %25 : vector<24x1xf32> to vector<24x128xf32>
    %28 = arith.mulf %27, %26 : vector<24x128xf32>
    %29 = arith.addf %24, %28 : vector<24x128xf32>
    %30 = vector.extract_strided_slice %15 {offsets = [0, 3], sizes = [24, 1], strides = [1, 1]} : vector<24x8xf32> to vector<24x1xf32>
    %c0_8 = arith.constant 0 : index
    %c384 = arith.constant 384 : index
    %31 = vector.load %arg2[%c0_8, %c384] : memref<24x1024xf32, #tpu.memory_space<vmem>>, vector<24x128xf32>
    %32 = vector.broadcast %30 : vector<24x1xf32> to vector<24x128xf32>
    %33 = arith.mulf %32, %31 : vector<24x128xf32>
    %34 = arith.addf %29, %33 : vector<24x128xf32>
    %35 = vector.extract_strided_slice %15 {offsets = [0, 4], sizes = [24, 1], strides = [1, 1]} : vector<24x8xf32> to vector<24x1xf32>
    %c0_9 = arith.constant 0 : index
    %c512 = arith.constant 512 : index
    %36 = vector.load %arg2[%c0_9, %c512] : memref<24x1024xf32, #tpu.memory_space<vmem>>, vector<24x128xf32>
    %37 = vector.broadcast %35 : vector<24x1xf32> to vector<24x128xf32>
    %38 = arith.mulf %37, %36 : vector<24x128xf32>
    %39 = arith.addf %34, %38 : vector<24x128xf32>
    %40 = vector.extract_strided_slice %15 {offsets = [0, 5], sizes = [24, 1], strides = [1, 1]} : vector<24x8xf32> to vector<24x1xf32>
    %c0_10 = arith.constant 0 : index
    %c640 = arith.constant 640 : index
    %41 = vector.load %arg2[%c0_10, %c640] : memref<24x1024xf32, #tpu.memory_space<vmem>>, vector<24x128xf32>
    %42 = vector.broadcast %40 : vector<24x1xf32> to vector<24x128xf32>
    %43 = arith.mulf %42, %41 : vector<24x128xf32>
    %44 = arith.addf %39, %43 : vector<24x128xf32>
    %45 = vector.extract_strided_slice %15 {offsets = [0, 6], sizes = [24, 1], strides = [1, 1]} : vector<24x8xf32> to vector<24x1xf32>
    %c0_11 = arith.constant 0 : index
    %c768 = arith.constant 768 : index
    %46 = vector.load %arg2[%c0_11, %c768] : memref<24x1024xf32, #tpu.memory_space<vmem>>, vector<24x128xf32>
    %47 = vector.broadcast %45 : vector<24x1xf32> to vector<24x128xf32>
    %48 = arith.mulf %47, %46 : vector<24x128xf32>
    %49 = arith.addf %44, %48 : vector<24x128xf32>
    %50 = vector.extract_strided_slice %15 {offsets = [0, 7], sizes = [24, 1], strides = [1, 1]} : vector<24x8xf32> to vector<24x1xf32>
    %c0_12 = arith.constant 0 : index
    %c896 = arith.constant 896 : index
    %51 = vector.load %arg2[%c0_12, %c896] : memref<24x1024xf32, #tpu.memory_space<vmem>>, vector<24x128xf32>
    %52 = vector.broadcast %50 : vector<24x1xf32> to vector<24x128xf32>
    %53 = arith.mulf %52, %51 : vector<24x128xf32>
    %54 = arith.addf %49, %53 : vector<24x128xf32>
    %c0_13 = arith.constant 0 : index
    %c0_14 = arith.constant 0 : index
    %55 = vector.load %arg3[%c0_13, %c0_14] : memref<24x128xf32, #tpu.memory_space<vmem>>, vector<24x128xf32>
    tpu.vector_store %arg3[%c0_13, %c0_14], %54 {strides = array<i32>} : memref<24x128xf32, #tpu.memory_space<vmem>>, vector<24x128xf32>,
    return
  }
  func.func @transform_0(%arg0: i32) -> (i32, i32) {
    %c0_i32 = arith.constant 0 : i32
    %c0_i32_0 = arith.constant 0 : i32
    return %arg0, %c0_i32 : i32, i32
  }
  func.func @transform_1(%arg0: i32) -> (i32, i32) {
    %c0_i32 = arith.constant 0 : i32
    %c0_i32_0 = arith.constant 0 : i32
    return %arg0, %c0_i32 : i32, i32
  }
  func.func @transform_2(%arg0: i32) -> (i32, i32) {
    %c0_i32 = arith.constant 0 : i32
    %c0_i32_0 = arith.constant 0 : i32
    return %arg0, %c0_i32 : i32, i32
  }
}

</mosaic_0001>

<bundles_post_ra>
// kernel: tpu_custom_call.1
= control target key start
LH: loop header
LB: loop body
LE: loop exit
PB: predicated region body
PF: predicated region fallthrough
CT: control target
= control target key end

     0   :  { %7 = vsyncpa [#allocation3], 0  ;;  %s475_s0 = inlined_call_operand.vmem [shape: f32[19,8], index: 0, kind: input, shape index: {}]   ;;  %s476_s1 = inlined_call_operand.hbm [shape: f32[19,1024], index: 1, kind: input, shape index: {}]   ;;  %s477_s2 = inlined_call_operand.hbm [shape: f32[19,128], index: 2, kind: output, shape index: {}]  }
   0x1   :  { %8 = vsyncpa [#allocation4], 0  ;;  %s15_s11 = sshll.u32 %s476_s1, 4  ;;  %s402_s12 = smov [#allocation2]   ;;  %s16_s11 = int_to_ptr.hbm [resolvable:$true] %s15_s11 }
   0x2   :  { %s17_s13 = sshll.u32 %s402_s12, 4  ;;  %s403_s14 = smov 1024   ;;  %s18_s13 = int_to_ptr.vmem [resolvable:$true] %s17_s13 }
   0x3   :  { %s404_s15 = smov 64  }
   0x4   :  { %23 = dma.hbm_to_vmem [thread:$0]  %s16_s11, 3072, %s18_s13, [#allocation3], %s403_s14, %s403_s14, %s404_s15  }
   0x5   :  { %398 = dma.done.wait [#allocation3], 3072  }
   0x6   :  { %399 = vsyncadd [#allocation3], 4294964224  ;;  %v28_v0 = vld [vmem:[%s475_s0] sm:$0xff]  ;;  %v29_v1 = vld [vmem:[%s475_s0 + $0x8] sm:$0xff]  ;;  %vm40_vm1 = vcmask 64512   ;;  %v405_v27 = vmov 0  }
   0x7   :  { %v30_v2 = vld [vmem:[%s475_s0 + $0x10] sm:$0xff]  ;;  %vm31_vm0 = vcmp.gt.f32.partialorder %v28_v0, 0.0  ;;  %v34_v3 = vmul.f32 0.01, %v28_v0  ;;  %v35_v6 = vmul.f32 0.01, %v29_v1  ;;  %317 = vset.pattern.permute.xlu0 %v405_v27  ;;  %318 = vset.pattern.permute.xlu1 %v405_v27 }
   0x8   :  { %vm33_vm2 = vcmp.gt.f32.partialorder %v30_v2, 0.0  ;;  %v36_v4 = vmul.f32 0.01, %v30_v2  ;;  %vm32_vm3 = vcmp.gt.f32.partialorder %v29_v1, 0.0  ;;  %319 = vset.pattern.permute.xlu2 %v405_v27  ;;  %v406_v59 = vmov 2   ;;  %v157_v27 = vld [vmem:[#allocation2 + $0x90] sm:$0xff] }
   0x9   :  { %v37_v5 = vsel %vm31_vm0, %v28_v0, %v34_v3  ;;  %v38_v10 = vsel %vm32_vm3, %v29_v1, %v35_v6  ;;  %v407_v1 = vmov 1   ;;  %v409_v3 = vmov 5   ;;  %s413_s0 = smov [#allocation5]   ;;  %s290_s24 = sshll.u32 %s477_s2, 4  ;;  %s291_s24 = int_to_ptr.hbm [resolvable:$true] %s290_s24 }
   0xa   :  { %v41_v7 = vsel %vm40_vm1, %v37_v5, -inf  ;;  %v39_v8 = vsel %vm33_vm2, %v30_v2, %v36_v4  ;;  %v44_v11 = vsel %vm40_vm1, %v38_v10, -inf  ;;  %v408_v2 = vmov 4   ;;  %s288_s1 = sshll.u32 %s413_s0, 4  ;;  %s414_s25 = smov 128   ;;  %s289_s1 = int_to_ptr.vmem [resolvable:$true] %s288_s1 }
   0xb   :  { %42 = vmax.xlane.f32.xlu0 %v41_v7  ;;  %v47_v9 = vsel %vm40_vm1, %v39_v8, -inf  ;;  %v410_v4 = vmov 3   ;;  %v412_v6 = vmov 6   ;;  %s415_s26 = smov 8  }
   0xc   :  { %48 = vmax.xlane.f32.xlu1 %v47_v9 }
  0x13   :  { %45 = vmax.xlane.f32.xlu0 %v44_v11 }
  0x7e   :  { %v43_v12 = vpop.xlane.xlu0 %42 }
  0x7f   :  { %v50_v13 = vsub.f32 %v37_v5, %v43_v12  ;;  %v49_v15 = vpop.xlane.xlu1 %48  ;;  %v411_v5 = vmov 7  }
  0x80   :  { %v52_v18 = vsub.f32 %v39_v8, %v49_v15 }
  0x81   :  { %v53_v14 = vmul.f32 1.442695, %v50_v13 }
  0x82   :  { %v57_v22 = vmul.f32 1.442695, %v52_v18 }
  0x83   :  { %338 = vpow2.f32 %v53_v14 }
  0x86   :  { %v46_v16 = vpop.xlane.xlu0 %45 }
  0x87   :  { %v51_v17 = vsub.f32 %v38_v10, %v46_v16 }
  0x89   :  { %v339_v19 = vpop.eup %338  ;;  %v55_v20 = vmul.f32 1.442695, %v51_v17 }
  0x8a   :  { %v59_v21 = vsel %vm40_vm1, %v339_v19, 0.0 }
  0x8b   :  { %340 = vpow2.f32 %v55_v20  ;;  %60 = vadd.xlane.f32.xlu1 %v59_v21 }
  0x8c   :  { %342 = vpow2.f32 %v57_v22 }
  0x91   :  { %v341_v23 = vpop.eup %340 }
  0x92   :  { %v62_v24 = vsel %vm40_vm1, %v341_v23, 0.0  ;;  %v448_v25 = vpop.eup %342 }
  0x93   :  { %63 = vadd.xlane.f32.xlu2 %v62_v24  ;;  %v65_v26 = vsel %vm40_vm1, %v448_v25, 0.0  ;;  %v135_v24 = vld [vmem:[#allocation2 + $0x48] sm:$0xff] }
  0x9b   :  { %66 = vadd.xlane.f32.xlu2 %v65_v26  ;;  %v115_v26 = vld [vmem:[#allocation2 + $0x80] sm:$0xff] }
  0xfe   :  { %v61_v28 = vpop.xlane.xlu1 %60 }
  0xff   :  { %344 = vrcp.f32 %v61_v28  ;;  %v79_v33 = vand.u32 2147483648, %v61_v28  ;;  %v77_v35 = vand.u32 2147483647, %v61_v28  ;;  %vm73_vm5 = vweird.f32 %v61_v28 }
 0x101   :  { %v80_v38 = vor.u32 1.1754944e-38, %v79_v33  ;;  %vm78_vm7 = vcmp.eq.f32.partialorder %v77_v35, 8.507059e+37  ;;  %v199_v35 = vld [vmem:[#allocation2 + $0xa0] sm:$0xff] }
 0x105   :  { %v345_v29 = vpop.eup %344 }
 0x106   :  { %v69_v30 = vmul.f32 %v345_v29, %v61_v28  ;;  %v64_v31 = vpop.xlane.xlu2 %63  ;;  %vm74_vm4 = vweird.f32 %v345_v29  ;;  %v114_v28 = vld [vmem:[#allocation2 + $0x40] sm:$0xff] }
 0x107   :  { %346 = vrcp.f32 %v64_v31  ;;  %vm75_vm6 = vmor %vm73_vm5, %vm74_vm4  ;;  %v93_v45 = vand.u32 2147483648, %v64_v31  ;;  %v91_v47 = vand.u32 2147483647, %v64_v31  ;;  %vm87_vm9 = vweird.f32 %v64_v31 }
 0x108   :  { %v70_v32 = vsub.f32 1.0, %v69_v30 }
 0x109   :  { %v94_v50 = vor.u32 1.1754944e-38, %v93_v45  ;;  %vm92_vm11 = vcmp.eq.f32.partialorder %v91_v47, 8.507059e+37 }
 0x10a   :  { %v71_v34 = vmul.f32 %v345_v29, %v70_v32 }
 0x10c   :  { %v72_v36 = vadd.f32 %v345_v29, %v71_v34 }
 0x10d   :  { %v347_v37 = vpop.eup %346 }
 0x10e   :  { %v76_v39 = vsel %vm75_vm6, %v345_v29, %v72_v36  ;;  %v83_v40 = vmul.f32 %v347_v37, %v64_v31  ;;  %v67_v41 = vpop.xlane.xlu2 %66  ;;  %vm88_vm8 = vweird.f32 %v347_v37  ;;  %v178_v31 = vld [vmem:[#allocation2 + $0x98] sm:$0xff] }
 0x10f   :  { %v81_v42 = vsel %vm78_vm7, %v80_v38, %v76_v39  ;;  %348 = vrcp.f32 %v67_v41  ;;  %vm89_vm10 = vmor %vm87_vm9, %vm88_vm8  ;;  %v107_v56 = vand.u32 2147483648, %v67_v41  ;;  %vm101_vm12 = vweird.f32 %v67_v41  ;;  %v177_v38 = vld [vmem:[#allocation2 + $0x58] sm:$0xff] }
 0x110   :  { %v452_v43 = vmul.f32 %v339_v19, %v81_v42  ;;  %v84_v44 = vsub.f32 1.0, %v83_v40  ;;  %v105_v58 = vand.u32 2147483647, %v67_v41  ;;  %v134_v42 = vld [vmem:[#allocation2 + $0x8] sm:$0xff] }
 0x111   :  { %v108_v61 = vor.u32 1.1754944e-38, %v107_v56 }
 0x112   :  { %v85_v46 = vmul.f32 %v347_v37, %v84_v44  ;;  %118 = vperm.xlu0 %317, %v452_v43   ;;  %vm106_vm15 = vcmp.eq.f32.partialorder %v105_v58, 8.507059e+37  ;;  %v176_v58 = vld [vmem:[#allocation2 + $0x18] sm:$0xff] }
 0x114   :  { %v86_v48 = vadd.f32 %v347_v37, %v85_v46  ;;  %v198_v46 = vld [vmem:[#allocation2 + $0x60] sm:$0xff] }
 0x115   :  { %v349_v49 = vpop.eup %348 }
 0x116   :  { %v90_v51 = vsel %vm89_vm10, %v347_v37, %v86_v48  ;;  %v97_v52 = vmul.f32 %v349_v49, %v67_v41  ;;  %vm102_vm13 = vweird.f32 %v349_v49  ;;  %v156_v37 = vld [vmem:[#allocation2 + $0x50] sm:$0xff]  ;;  %v113_v41 = vld [vmem:[#allocation2] sm:$0xff] }
 0x117   :  { %v95_v53 = vsel %vm92_vm11, %v94_v50, %v90_v51  ;;  %vm103_vm14 = vmor %vm101_vm12, %vm102_vm13  ;;  %v155_v50 = vld [vmem:[#allocation2 + $0x10] sm:$0xff] }
 0x118   :  { %v111_v54 = vmul.f32 %v341_v23, %v95_v53  ;;  %v98_v55 = vsub.f32 1.0, %v97_v52  ;;  %v136_v23 = vld [vmem:[#allocation2 + $0x88] sm:$0xff] }
 0x11a   :  { %v99_v57 = vmul.f32 %v349_v49, %v98_v55  ;;  %323 = vset.pattern.permute.xlu0 %v406_v59  ;;  %123 = vperm.xlu1 %318, %v111_v54   ;;  %v219_v55 = vld [vmem:[#allocation2 + $0x68] sm:$0xff] }
 0x11b   :  { %163 = vperm.xlu0 %323, %v111_v54  }
 0x11c   :  { %v100_v60 = vadd.f32 %v349_v49, %v99_v57  ;;  %v220_v57 = vld [vmem:[#allocation2 + $0xa8] sm:$0xff] }
 0x11e   :  { %v104_v62 = vsel %vm103_vm14, %v349_v49, %v100_v60  ;;  %v241_v60 = vld [vmem:[#allocation2 + $0xb0] sm:$0xff] }
 0x11f   :  { %v109_v63 = vsel %vm106_vm15, %v108_v61, %v104_v62 }
 0x120   :  { %v112_v0 = vmul.f32 %v448_v25, %v109_v63 }
 0x122   :  { %321 = vset.pattern.permute.xlu1 %v407_v1  ;;  %128 = vperm.xlu2 %319, %v112_v0  }
 0x123   :  { %327 = vset.pattern.permute.xlu0 %v408_v2  ;;  %142 = vperm.xlu1 %321, %v111_v54  }
 0x124   :  { %201 = vperm.xlu0 %327, %v452_v43  }
 0x12a   :  { %320 = vset.pattern.permute.xlu2 %v407_v1 }
 0x12b   :  { %322 = vset.pattern.permute.xlu1 %v406_v59  ;;  %138 = vperm.xlu2 %320, %v452_v43  }
 0x12c   :  { %332 = vset.pattern.permute.xlu0 %v409_v3  ;;  %159 = vperm.xlu1 %322, %v452_v43  }
 0x12d   :  { %230 = vperm.xlu0 %332, %v112_v0  }
 0x133   :  { %146 = vperm.xlu2 %320, %v112_v0  }
 0x134   :  { %325 = vset.pattern.permute.xlu1 %v410_v4 }
 0x135   :  { %180 = vperm.xlu1 %325, %v452_v43   ;;  %336 = vset.pattern.permute.xlu0 %v411_v5 }
 0x136   :  { %268 = vperm.xlu0 %336, %v111_v54  }
 0x13b   :  { %324 = vset.pattern.permute.xlu2 %v406_v59 }
 0x13c   :  { %167 = vperm.xlu2 %324, %v112_v0  }
 0x13d   :  { %188 = vperm.xlu1 %325, %v112_v0  }
 0x144   :  { %326 = vset.pattern.permute.xlu2 %v410_v4 }
 0x145   :  { %329 = vset.pattern.permute.xlu1 %v408_v2  ;;  %184 = vperm.xlu2 %326, %v111_v54  }
 0x146   :  { %209 = vperm.xlu1 %329, %v112_v0  }
 0x14d   :  { %328 = vset.pattern.permute.xlu2 %v408_v2 }
 0x14e   :  { %331 = vset.pattern.permute.xlu1 %v409_v3  ;;  %205 = vperm.xlu2 %328, %v111_v54  }
 0x14f   :  { %226 = vperm.xlu1 %331, %v111_v54  }
 0x156   :  { %330 = vset.pattern.permute.xlu2 %v409_v3 }
 0x157   :  { %334 = vset.pattern.permute.xlu1 %v412_v6  ;;  %222 = vperm.xlu2 %330, %v452_v43  }
 0x158   :  { %247 = vperm.xlu1 %334, %v111_v54  }
 0x15f   :  { %333 = vset.pattern.permute.xlu2 %v412_v6 }
 0x160   :  { %335 = vset.pattern.permute.xlu1 %v411_v5  ;;  %243 = vperm.xlu2 %333, %v452_v43  }
 0x161   :  { %264 = vperm.xlu1 %335, %v452_v43  }
 0x168   :  { %251 = vperm.xlu2 %333, %v112_v0  }
 0x170   :  { %337 = vset.pattern.permute.xlu2 %v411_v5  ;;  %v240_v5 = vld [vmem:[#allocation2 + $0x70] sm:$0xff] }
 0x171   :  { %272 = vperm.xlu2 %337, %v112_v0  }
 0x17c   :  { %v129_v7 = vpop.permute.xlu2 %128 }
 0x17d   :  { %v133_v32 = vmul.f32 %v129_v7, %v115_v26  ;;  %v262_v7 = vld [vmem:[#allocation2 + $0xb8] sm:$0xff]  ;;  %v239_v26 = vld [vmem:[#allocation2 + $0x30] sm:$0xff] }
 0x184   :  { %v119_v15 = vpop.permute.xlu0 %118 }
 0x185   :  { %v139_v8 = vpop.permute.xlu2 %138  ;;  %v131_v52 = vmul.f32 %v119_v15, %v113_v41  ;;  %v218_v15 = vld [vmem:[#allocation2 + $0x28] sm:$0xff] }
 0x186   :  { %v149_v53 = vmul.f32 %v139_v8, %v134_v42  ;;  %v261_v8 = vld [vmem:[#allocation2 + $0x78] sm:$0xff] }
 0x188   :  { %v152_v1 = vadd.f32 %v149_v53, %v131_v52 }
 0x18c   :  { %v124_v9 = vpop.permute.xlu1 %123 }
 0x18d   :  { %v147_v10 = vpop.permute.xlu2 %146  ;;  %v164_v18 = vpop.permute.xlu0 %163  ;;  %v132_v34 = vmul.f32 %v124_v9, %v114_v28 }
 0x18e   :  { %v151_v29 = vmul.f32 %v147_v10, %v136_v23  ;;  %v171_v49 = vmul.f32 %v164_v18, %v156_v37 }
 0x190   :  { %v154_v36 = vadd.f32 %v151_v29, %v133_v32 }
 0x195   :  { %v143_v11 = vpop.permute.xlu1 %142 }
 0x196   :  { %v168_v12 = vpop.permute.xlu2 %167  ;;  %v465_v21 = vpop.permute.xlu0 %201  ;;  %v150_v30 = vmul.f32 %v143_v11, %v135_v24 }
 0x197   :  { %v172_v33 = vmul.f32 %v168_v12, %v157_v27 }
 0x198   :  { %v153_v43 = vadd.f32 %v150_v30, %v132_v34 }
 0x199   :  { %v175_v45 = vadd.f32 %v172_v33, %v154_v36  ;;  %v260_v33 = vld [vmem:[#allocation2 + $0x38] sm:$0xff] }
 0x19a   :  { %v174_v56 = vadd.f32 %v171_v49, %v153_v43 }
 0x19e   :  { %v160_v13 = vpop.permute.xlu1 %159 }
 0x19f   :  { %v185_v14 = vpop.permute.xlu2 %184  ;;  %v231_v39 = vpop.permute.xlu0 %230  ;;  %v170_v61 = vmul.f32 %v160_v13, %v155_v50 }
 0x1a0   :  { %v192_v51 = vmul.f32 %v185_v14, %v177_v38  ;;  %v235_v2 = vmul.f32 %v231_v39, %v220_v57  ;;  %v197_v14 = vld [vmem:[#allocation2 + $0x20] sm:$0xff] }
 0x1a1   :  { %v173_v9 = vadd.f32 %v170_v61, %v152_v1  ;;  %v212_v27 = vmul.f32 %v465_v21, %v197_v14 }
 0x1a2   :  { %v195_v63 = vadd.f32 %v192_v51, %v174_v56 }
 0x1a7   :  { %v181_v16 = vpop.permute.xlu1 %180 }
 0x1a8   :  { %v206_v17 = vpop.permute.xlu2 %205  ;;  %v191_v3 = vmul.f32 %v181_v16, %v176_v58  ;;  %v269_v10 = vpop.permute.xlu0 %268 }
 0x1a9   :  { %v213_v59 = vmul.f32 %v206_v17, %v198_v46  ;;  %v276_v24 = vmul.f32 %v269_v10, %v261_v8 }
 0x1ab   :  { %v216_v6 = vadd.f32 %v213_v59, %v195_v63 }
 0x1af   :  { %v189_v19 = vpop.permute.xlu1 %188 }
 0x1b0   :  { %v193_v40 = vmul.f32 %v189_v19, %v178_v31  ;;  %v194_v19 = vadd.f32 %v191_v3, %v173_v9 }
 0x1b1   :  { %v463_v20 = vpop.permute.xlu2 %222 }
 0x1b2   :  { %v196_v54 = vadd.f32 %v193_v40, %v175_v45  ;;  %v233_v28 = vmul.f32 %v463_v20, %v218_v15  ;;  %v215_v31 = vadd.f32 %v212_v27, %v194_v19 }
 0x1b4   :  { %v236_v34 = vadd.f32 %v233_v28, %v215_v31 }
 0x1b8   :  { %v210_v22 = vpop.permute.xlu1 %209 }
 0x1b9   :  { %v214_v47 = vmul.f32 %v210_v22, %v199_v35 }
 0x1ba   :  { %v467_v25 = vpop.permute.xlu2 %243 }
 0x1bb   :  { %v217_v62 = vadd.f32 %v214_v47, %v196_v54  ;;  %v254_v32 = vmul.f32 %v467_v25, %v239_v26 }
 0x1bd   :  { %v238_v11 = vadd.f32 %v235_v2, %v217_v62  ;;  %v257_v36 = vadd.f32 %v254_v32, %v236_v34 }
 0x1c1   :  { %v227_v44 = vpop.permute.xlu1 %226 }
 0x1c2   :  { %v252_v48 = vpop.permute.xlu2 %251  ;;  %v234_v0 = vmul.f32 %v227_v44, %v219_v55 }
 0x1c3   :  { %v256_v4 = vmul.f32 %v252_v48, %v241_v60 }
 0x1c4   :  { %v237_v17 = vadd.f32 %v234_v0, %v216_v6 }
 0x1c5   :  { %v259_v22 = vadd.f32 %v256_v4, %v238_v11 }
 0x1ca   :  { %v248_v12 = vpop.permute.xlu1 %247 }
 0x1cb   :  { %v255_v18 = vmul.f32 %v248_v12, %v240_v5  ;;  %v273_v13 = vpop.permute.xlu2 %272 }
 0x1cc   :  { %v277_v23 = vmul.f32 %v273_v13, %v262_v7 }
 0x1cd   :  { %v258_v16 = vadd.f32 %v255_v18, %v237_v17 }
 0x1ce   :  { %v280_v29 = vadd.f32 %v277_v23, %v259_v22 }
 0x1cf   :  { %v279_v30 = vadd.f32 %v276_v24, %v258_v16 }
 0x1d0   :  { %283 = vst [vmem:[#allocation5 + $0x10] sm:$0xff] %v280_v29 }
 0x1d1   :  { %282 = vst [vmem:[#allocation5 + $0x8] sm:$0xff] %v279_v30 }
 0x1d3   :  { %v265_v35 = vpop.permute.xlu1 %264 }
 0x1d4   :  { %v275_v21 = vmul.f32 %v265_v35, %v260_v33 }
 0x1d6   :  { %v278_v20 = vadd.f32 %v275_v21, %v257_v36 }
 0x1d8   :  { %281 = vst [vmem:[#allocation5] sm:$0xff] %v278_v20 }
 0x1d9   :  { %296 = dma.vmem_to_hbm [thread:$0]  %s289_s1, 384, %s291_s24, [#allocation4], %s414_s25, %s414_s25, %s415_s26  }
 0x1da   :  { %400 = dma.done.wait [#allocation4], 384  }
 0x1db   :  { %401 = vsyncadd [#allocation4], 4294966912 }
 0x1dc   :  { %301 = vsyncpa [#allocation3], 1 }
 0x1dd   :  { %302 = vsyncpa [#allocation4], 1 }

</bundles_post_ra>
